<compile_context>
chip_gen: v7x
topology: tpu7x:2x2x1
jax: 0.10.0
libtpu: 0.0.40
codegen_flags: <defaults>
</compile_context>

<pallas_src>
import jax
import jax.numpy as jnp
from jax.experimental import pallas as pl
from jax.experimental.pallas import tpu as pltpu


def _fusion_kernel(a_ref, x1_ref, x2_ref, x3_ref, x4_ref, o_ref):
    # a_ref : (4, 4, 1) f32 -- sigmoid(alpha_k), axis0 = branch, axis1 = class
    # x*_ref: (B, 5, T)     -- native dtype
    # o_ref : (B, 4, T)
    def branch(x_ref, k):
        x = x_ref[...].astype(jnp.float32)            # (B, 5, T)
        xr = x[:, :4, :] + x[:, 4:5, :]               # (B, 4, T)
        a = a_ref[k]                                  # (4, 1) -> broadcasts over B, lanes
        return a + (1.0 - a) * xr

    p = (branch(x1_ref, 0) * branch(x2_ref, 1) *
         branch(x3_ref, 2) * branch(x4_ref, 3))       # (B, 4, T) f32
    ksum = jnp.sum(p, axis=1, keepdims=True)          # (B, 1, T)
    inv = pl.reciprocal(ksum, approx=False)           # exact; single recip vs 4 divides
    o_ref[...] = (p * inv).astype(o_ref.dtype)


# Double-buffered data budget kept well under every generation's scoped-VMEM
# default (v5e 16 MiB default-scoped would be tight, so we also raise the
# limit explicitly to 32 MiB -- safe on v5e/v6e (128 MiB) and v7x (64 MiB)).
_DOUBLE_BUFFER_BUDGET = 16 * 1024 * 1024


def _choose_tile_s(S, B, itemsize):
    """Largest multiple-of-128 divisor of S fitting the VMEM budget."""
    # Resident bytes per lane per pipeline buffer:
    #   4 inputs x 5 channels + 4 output channels, all in the native dtype.
    bytes_per_lane = B * (4 * 5 + 4) * itemsize
    cap = _DOUBLE_BUFFER_BUDGET // (2 * bytes_per_lane)
    cap = min(max((cap // 128) * 128, 128), 32768)
    if S <= cap:
        return S                                   # whole spatial extent per step
    if S % 128 == 0:
        n = S // 128
        best = 1
        d = 1
        while d * d <= n:
            if n % d == 0:
                for f in (d, n // d):
                    if 128 * f <= cap and f > best:
                        best = f
            d += 1
        return 128 * best
    # S large but not 128-aligned: a partial last-dim tile must be a multiple
    # of 128 (layout rule), which cannot divide such an S, so use full extent.
    # TODO(synk): pad-and-mask path for very large non-128-aligned spatial sizes.
    return S


def fusion_forward(i1, i2, i3, i4, alpha1, alpha2, alpha3, alpha4, *, tile_s=None):
    B, C, H, W, D = i1.shape
    assert C == 5, "forward expects 5 input channels (module produces 4 outputs)"
    S = H * W * D
    dtype = i1.dtype

    if tile_s is None:
        tile_s = _choose_tile_s(S, B, jnp.dtype(dtype).itemsize)
    assert S % tile_s == 0, "tile_s must divide the flattened spatial size"
    assert tile_s % 128 == 0 or tile_s == S, "tile_s must be 128-aligned or full extent"

    # Flatten spatial; keep native dtype (no full-size f32 copies in HBM).
    xs = [x.reshape(B, C, S) for x in (i1, i2, i3, i4)]

    # Hoist sigmoid(alpha) out of the kernel: 16 scalars total, stacked (4,4,1).
    a_stack = jax.nn.sigmoid(
        jnp.stack([a.reshape(4, 1).astype(jnp.float32)
                   for a in (alpha1, alpha2, alpha3, alpha4)], axis=0))

    alpha_spec = pl.BlockSpec((4, 4, 1), lambda s: (0, 0, 0))
    x_spec = pl.BlockSpec((B, C, tile_s), lambda s: (0, 0, s))
    o_spec = pl.BlockSpec((B, 4, tile_s), lambda s: (0, 0, s))

    out = pl.pallas_call(
        _fusion_kernel,
        out_shape=jax.ShapeDtypeStruct((B, 4, S), dtype),
        grid_spec=pltpu.PrefetchScalarGridSpec(
            num_scalar_prefetch=0,
            grid=(S // tile_s,),
            in_specs=[alpha_spec, x_spec, x_spec, x_spec, x_spec],
            out_specs=o_spec,
        ),
        compiler_params=pltpu.CompilerParams(
            dimension_semantics=("parallel",),
            vmem_limit_bytes=32 * 1024 * 1024,
        ),
    )(a_stack, *xs)

    return out.reshape(B, 4, H, W, D)


def fusion_reference(i1, i2, i3, i4, a1, a2, a3, a4):
    def branch(x, a):
        x = x.astype(jnp.float32)
        xr = x[:, :4] + x[:, 4:5]
        al = jax.nn.sigmoid(a.reshape(1, 4, 1, 1, 1).astype(jnp.float32))
        return al + (1.0 - al) * xr
    p = (branch(i1, a1) * branch(i2, a2) *
         branch(i3, a3) * branch(i4, a4))
    return p / jnp.sum(p, axis=1, keepdims=True)


if __name__ == "__main__":
    key = jax.random.PRNGKey(0)

    def run_case(B, H, W, D, tile_s=None):
        kk = jax.random.fold_in(key, H * W * D)
        k1, k2, k3, k4 = jax.random.split(kk, 4)
        shape = (B, 5, H, W, D)
        i1 = jax.random.normal(k1, shape, dtype=jnp.float32)
        i2 = jax.random.normal(k2, shape, dtype=jnp.float32)
        i3 = jax.random.normal(k3, shape, dtype=jnp.float32)
        i4 = jax.random.normal(k4, shape, dtype=jnp.float32)

        # Parameters: nn.init.constant_(alpha, 0) -> zeros of shape (4,1,1,1)
        a1 = jnp.zeros((4, 1, 1, 1), jnp.float32)
        a2 = jnp.zeros((4, 1, 1, 1), jnp.float32)
        a3 = jnp.zeros((4, 1, 1, 1), jnp.float32)
        a4 = jnp.zeros((4, 1, 1, 1), jnp.float32)

        out = fusion_forward(i1, i2, i3, i4, a1, a2, a3, a4, tile_s=tile_s)
        out = jax.block_until_ready(out)

        ref = fusion_reference(i1, i2, i3, i4, a1, a2, a3, a4)
        assert out.shape == (B, 4, H, W, D)
        assert jnp.allclose(out, ref.astype(out.dtype), atol=1e-5, rtol=1e-5), \
            "mismatch vs reference"

    # Small demo shapes: single-step grid (auto tile) and a multi-step grid.
    run_case(2, 4, 4, 8)               # S = 128, auto tile -> grid (1,)
    run_case(2, 8, 8, 8, tile_s=128)   # S = 512, forced tile -> grid (4,)

    print("KERNEL_OK")
</pallas_src>

<mosaic_0001>
module attributes {stable_mosaic.version = 11 : i64} {
  func.func @_fusion_kernel(%arg0: i32, %arg1: memref<4x4x1xf32, #tpu.memory_space<vmem>>, %arg2: memref<2x5x128xf32, #tpu.memory_space<vmem>>, %arg3: memref<2x5x128xf32, #tpu.memory_space<vmem>>, %arg4: memref<2x5x128xf32, #tpu.memory_space<vmem>>, %arg5: memref<2x5x128xf32, #tpu.memory_space<vmem>>, %arg6: memref<2x4x128xf32, #tpu.memory_space<vmem>>) attributes {dimension_semantics = [#tpu.dimension_semantics<parallel>], iteration_bounds = array<i64: 1>, scalar_prefetch = 0 : i64, scratch_operands = 0 : i64, tpu.core_type = #tpu.core_type<tc>, window_params = [{pipeline_mode = #tpu.pipeline_mode<synchronous>, transform_indices = @transform_0, window_bounds = array<i64: 4, 4, 1>}, {transform_indices = @transform_1, window_bounds = array<i64: 2, 5, 128>}, {transform_indices = @transform_2, window_bounds = array<i64: 2, 5, 128>}, {transform_indices = @transform_3, window_bounds = array<i64: 2, 5, 128>}, {transform_indices = @transform_4, window_bounds = array<i64: 2, 5, 128>}, {transform_indices = @transform_5, window_bounds = array<i64: 2, 4, 128>}]} {
    %c0 = arith.constant 0 : index
    %c0_0 = arith.constant 0 : index
    %c0_1 = arith.constant 0 : index
    %0 = vector.load %arg2[%c0, %c0_0, %c0_1] : memref<2x5x128xf32, #tpu.memory_space<vmem>>, vector<2x5x128xf32>
    %1 = vector.extract_strided_slice %0 {offsets = [0, 0, 0], sizes = [2, 4, 128], strides = [1, 1, 1]} : vector<2x5x128xf32> to vector<2x4x128xf32>
    %2 = vector.extract_strided_slice %0 {offsets = [0, 4, 0], sizes = [2, 1, 128], strides = [1, 1, 1]} : vector<2x5x128xf32> to vector<2x1x128xf32>
    %3 = vector.broadcast %2 : vector<2x1x128xf32> to vector<2x4x128xf32>
    %4 = arith.addf %1, %3 : vector<2x4x128xf32>
    %c0_2 = arith.constant 0 : index
    %c0_3 = arith.constant 0 : index
    %c0_4 = arith.constant 0 : index
    %5 = vector.load %arg1[%c0_2, %c0_3, %c0_4] : memref<4x4x1xf32, #tpu.memory_space<vmem>>, vector<1x4x1xf32>
    %6 = vector.shape_cast %5 : vector<1x4x1xf32> to vector<4x1xf32>
    %cst = arith.constant 1.000000e+00 : f32
    %7 = vector.broadcast %cst : f32 to vector<4x1xf32>
    %8 = arith.subf %7, %6 : vector<4x1xf32>
    %9 = vector.shape_cast %8 : vector<4x1xf32> to vector<1x4x1xf32>
    %10 = vector.broadcast %9 : vector<1x4x1xf32> to vector<2x4x128xf32>
    %11 = arith.mulf %10, %4 : vector<2x4x128xf32>
    %12 = vector.shape_cast %6 : vector<4x1xf32> to vector<1x4x1xf32>
    %13 = vector.broadcast %12 : vector<1x4x1xf32> to vector<2x4x128xf32>
    %14 = arith.addf %13, %11 : vector<2x4x128xf32>
    %c0_5 = arith.constant 0 : index
    %c0_6 = arith.constant 0 : index
    %c0_7 = arith.constant 0 : index
    %15 = vector.load %arg3[%c0_5, %c0_6, %c0_7] : memref<2x5x128xf32, #tpu.memory_space<vmem>>, vector<2x5x128xf32>
    %16 = vector.extract_strided_slice %15 {offsets = [0, 0, 0], sizes = [2, 4, 128], strides = [1, 1, 1]} : vector<2x5x128xf32> to vector<2x4x128xf32>
    %17 = vector.extract_strided_slice %15 {offsets = [0, 4, 0], sizes = [2, 1, 128], strides = [1, 1, 1]} : vector<2x5x128xf32> to vector<2x1x128xf32>
    %18 = vector.broadcast %17 : vector<2x1x128xf32> to vector<2x4x128xf32>
    %19 = arith.addf %16, %18 : vector<2x4x128xf32>
    %c1 = arith.constant 1 : index
    %c0_8 = arith.constant 0 : index
    %c0_9 = arith.constant 0 : index
    %20 = vector.load %arg1[%c1, %c0_8, %c0_9] : memref<4x4x1xf32, #tpu.memory_space<vmem>>, vector<1x4x1xf32>
    %21 = vector.shape_cast %20 : vector<1x4x1xf32> to vector<4x1xf32>
    %cst_10 = arith.constant 1.000000e+00 : f32
    %22 = vector.broadcast %cst_10 : f32 to vector<4x1xf32>
    %23 = arith.subf %22, %21 : vector<4x1xf32>
    %24 = vector.shape_cast %23 : vector<4x1xf32> to vector<1x4x1xf32>
    %25 = vector.broadcast %24 : vector<1x4x1xf32> to vector<2x4x128xf32>
    %26 = arith.mulf %25, %19 : vector<2x4x128xf32>
    %27 = vector.shape_cast %21 : vector<4x1xf32> to vector<1x4x1xf32>
    %28 = vector.broadcast %27 : vector<1x4x1xf32> to vector<2x4x128xf32>
    %29 = arith.addf %28, %26 : vector<2x4x128xf32>
    %30 = arith.mulf %14, %29 : vector<2x4x128xf32>
    %c0_11 = arith.constant 0 : index
    %c0_12 = arith.constant 0 : index
    %c0_13 = arith.constant 0 : index
    %31 = vector.load %arg4[%c0_11, %c0_12, %c0_13] : memref<2x5x128xf32, #tpu.memory_space<vmem>>, vector<2x5x128xf32>
    %32 = vector.extract_strided_slice %31 {offsets = [0, 0, 0], sizes = [2, 4, 128], strides = [1, 1, 1]} : vector<2x5x128xf32> to vector<2x4x128xf32>
    %33 = vector.extract_strided_slice %31 {offsets = [0, 4, 0], sizes = [2, 1, 128], strides = [1, 1, 1]} : vector<2x5x128xf32> to vector<2x1x128xf32>
    %34 = vector.broadcast %33 : vector<2x1x128xf32> to vector<2x4x128xf32>
    %35 = arith.addf %32, %34 : vector<2x4x128xf32>
    %c2 = arith.constant 2 : index
    %c0_14 = arith.constant 0 : index
    %c0_15 = arith.constant 0 : index
    %36 = vector.load %arg1[%c2, %c0_14, %c0_15] : memref<4x4x1xf32, #tpu.memory_space<vmem>>, vector<1x4x1xf32>
    %37 = vector.shape_cast %36 : vector<1x4x1xf32> to vector<4x1xf32>
    %cst_16 = arith.constant 1.000000e+00 : f32
    %38 = vector.broadcast %cst_16 : f32 to vector<4x1xf32>
    %39 = arith.subf %38, %37 : vector<4x1xf32>
    %40 = vector.shape_cast %39 : vector<4x1xf32> to vector<1x4x1xf32>
    %41 = vector.broadcast %40 : vector<1x4x1xf32> to vector<2x4x128xf32>
    %42 = arith.mulf %41, %35 : vector<2x4x128xf32>
    %43 = vector.shape_cast %37 : vector<4x1xf32> to vector<1x4x1xf32>
    %44 = vector.broadcast %43 : vector<1x4x1xf32> to vector<2x4x128xf32>
    %45 = arith.addf %44, %42 : vector<2x4x128xf32>
    %46 = arith.mulf %30, %45 : vector<2x4x128xf32>
    %c0_17 = arith.constant 0 : index
    %c0_18 = arith.constant 0 : index
    %c0_19 = arith.constant 0 : index
    %47 = vector.load %arg5[%c0_17, %c0_18, %c0_19] : memref<2x5x128xf32, #tpu.memory_space<vmem>>, vector<2x5x128xf32>
    %48 = vector.extract_strided_slice %47 {offsets = [0, 0, 0], sizes = [2, 4, 128], strides = [1, 1, 1]} : vector<2x5x128xf32> to vector<2x4x128xf32>
    %49 = vector.extract_strided_slice %47 {offsets = [0, 4, 0], sizes = [2, 1, 128], strides = [1, 1, 1]} : vector<2x5x128xf32> to vector<2x1x128xf32>
    %50 = vector.broadcast %49 : vector<2x1x128xf32> to vector<2x4x128xf32>
    %51 = arith.addf %48, %50 : vector<2x4x128xf32>
    %c3 = arith.constant 3 : index
    %c0_20 = arith.constant 0 : index
    %c0_21 = arith.constant 0 : index
    %52 = vector.load %arg1[%c3, %c0_20, %c0_21] : memref<4x4x1xf32, #tpu.memory_space<vmem>>, vector<1x4x1xf32>
    %53 = vector.shape_cast %52 : vector<1x4x1xf32> to vector<4x1xf32>
    %cst_22 = arith.constant 1.000000e+00 : f32
    %54 = vector.broadcast %cst_22 : f32 to vector<4x1xf32>
    %55 = arith.subf %54, %53 : vector<4x1xf32>
    %56 = vector.shape_cast %55 : vector<4x1xf32> to vector<1x4x1xf32>
    %57 = vector.broadcast %56 : vector<1x4x1xf32> to vector<2x4x128xf32>
    %58 = arith.mulf %57, %51 : vector<2x4x128xf32>
    %59 = vector.shape_cast %53 : vector<4x1xf32> to vector<1x4x1xf32>
    %60 = vector.broadcast %59 : vector<1x4x1xf32> to vector<2x4x128xf32>
    %61 = arith.addf %60, %58 : vector<2x4x128xf32>
    %62 = arith.mulf %46, %61 : vector<2x4x128xf32>
    %cst_23 = arith.constant dense<0.000000e+00> : vector<2x128xf32>
    %63 = vector.multi_reduction <add>, %62, %cst_23 [1] : vector<2x4x128xf32> to vector<2x128xf32>
    %64 = vector.shape_cast %63 : vector<2x128xf32> to vector<2x1x128xf32>
    %65 = tpu.reciprocal %64 : vector<2x1x128xf32> -> vector<2x1x128xf32>
    %66 = vector.broadcast %65 : vector<2x1x128xf32> to vector<2x4x128xf32>
    %67 = arith.mulf %62, %66 : vector<2x4x128xf32>
    %c0_24 = arith.constant 0 : index
    %c0_25 = arith.constant 0 : index
    %c0_26 = arith.constant 0 : index
    %68 = vector.load %arg6[%c0_24, %c0_25, %c0_26] : memref<2x4x128xf32, #tpu.memory_space<vmem>>, vector<2x4x128xf32>
    tpu.vector_store %arg6[%c0_24, %c0_25, %c0_26], %67 {strides = array<i32>} : memref<2x4x128xf32, #tpu.memory_space<vmem>>, vector<2x4x128xf32>,
    return
  }
  func.func @transform_0(%arg0: i32) -> (i32, i32, i32) {
    %c0_i32 = arith.constant 0 : i32
    %c0_i32_0 = arith.constant 0 : i32
    %c0_i32_1 = arith.constant 0 : i32
    %c0_i32_2 = arith.constant 0 : i32
    return %c0_i32, %c0_i32_0, %c0_i32_1 : i32, i32, i32
  }
  func.func @transform_1(%arg0: i32) -> (i32, i32, i32) {
    %c0_i32 = arith.constant 0 : i32
    %c0_i32_0 = arith.constant 0 : i32
    %c0_i32_1 = arith.constant 0 : i32
    return %c0_i32, %c0_i32_0, %arg0 : i32, i32, i32
  }
  func.func @transform_2(%arg0: i32) -> (i32, i32, i32) {
    %c0_i32 = arith.constant 0 : i32
    %c0_i32_0 = arith.constant 0 : i32
    %c0_i32_1 = arith.constant 0 : i32
    return %c0_i32, %c0_i32_0, %arg0 : i32, i32, i32
  }
  func.func @transform_3(%arg0: i32) -> (i32, i32, i32) {
    %c0_i32 = arith.constant 0 : i32
    %c0_i32_0 = arith.constant 0 : i32
    %c0_i32_1 = arith.constant 0 : i32
    return %c0_i32, %c0_i32_0, %arg0 : i32, i32, i32
  }
  func.func @transform_4(%arg0: i32) -> (i32, i32, i32) {
    %c0_i32 = arith.constant 0 : i32
    %c0_i32_0 = arith.constant 0 : i32
    %c0_i32_1 = arith.constant 0 : i32
    return %c0_i32, %c0_i32_0, %arg0 : i32, i32, i32
  }
  func.func @transform_5(%arg0: i32) -> (i32, i32, i32) {
    %c0_i32 = arith.constant 0 : i32
    %c0_i32_0 = arith.constant 0 : i32
    %c0_i32_1 = arith.constant 0 : i32
    return %c0_i32, %c0_i32_0, %arg0 : i32, i32, i32
  }
}

</mosaic_0001>

<bundles_post_ra>
// kernel: tpu_custom_call.1
= control target key start
LH: loop header
LB: loop body
LE: loop exit
PB: predicated region body
PF: predicated region fallthrough
CT: control target
= control target key end

     0   :  { %v216_v2 = vmov 0   ;;  %s298_s0 = inlined_call_operand.vmem [shape: f32[4,4,1], index: 0, kind: input, shape index: {}]   ;;  %s299_s1 = inlined_call_operand.vmem [shape: f32[2,5,128], index: 1, kind: input, shape index: {}]   ;;  %s300_s2 = inlined_call_operand.vmem [shape: f32[2,5,128], index: 2, kind: input, shape index: {}]   ;;  %s301_s3 = inlined_call_operand.vmem [shape: f32[2,5,128], index: 3, kind: input, shape index: {}]   ;;  %s302_s4 = inlined_call_operand.vmem [shape: f32[2,5,128], index: 4, kind: input, shape index: {}]   ;;  %s303_s5 = inlined_call_operand.hbm [shape: f32[2,4,128], index: 5, kind: output, shape index: {}]  }
   0x1   :  { %v33_v0 = vld [vmem:[%s298_s0] sm:$0xf]  ;;  %v179_v1 = vld [vmem:[%s298_s0 + $0x4] sm:$0xf]  ;;  %187 = vset.pattern.permute.xlu1 %v216_v2  ;;  %186 = vset.pattern.permute.xlu0 %v216_v2  ;;  %v180_v5 = vld [vmem:[%s298_s0 + $0x8] sm:$0xf] }
   0x2   :  { %v34_v3 = vsub.f32 1.0, %v33_v0  ;;  %44 = vperm.xlu1 %187, %v33_v0   ;;  %v63_v4 = vsub.f32 1.0, %v179_v1 }
   0x4   :  { %37 = vperm.xlu0 %186, %v34_v3  }
   0x5   :  { %10 = vsyncpa [#allocation3], 0  ;;  %v94_v6 = vsub.f32 1.0, %v180_v5  ;;  %v181_v7 = vld [vmem:[%s298_s0 + $0xc] sm:$0xf]  ;;  %v23_v9 = vlaneseq  ;;  %vm142_vm0 = vcmask 1043456  }
   0x6   :  { %73 = vperm.xlu1 %187, %v179_v1   ;;  %v125_v8 = vsub.f32 1.0, %v181_v7  ;;  %v49_v11 = vld [vmem:[%s300_s2] sm:$0x1f]  ;;  %v50_v12 = vld [vmem:[%s300_s2 + $0x8] sm:$0x1f] }
   0x7   :  { %v24_v10 = vshrl.u32 %v23_v9, 7  ;;  %v21_v14 = vld [vmem:[%s299_s1] sm:$0x1f]  ;;  %v22_v15 = vld [vmem:[%s299_s1 + $0x8] sm:$0x1f] }
   0x8   :  { %66 = vperm.xlu0 %186, %v63_v4   ;;  %v80_v18 = vld [vmem:[%s301_s3] sm:$0x1f]  ;;  %v81_v19 = vld [vmem:[%s301_s3 + $0x8] sm:$0x1f]  ;;  %s217_s3 = smov [#allocation2]  }
   0x9   :  { %v25_v13 = vsub.s32 4, %v24_v10  ;;  %v111_v28 = vld [vmem:[%s302_s4] sm:$0x1f]  ;;  %v112_v29 = vld [vmem:[%s302_s4 + $0x8] sm:$0x1f]  ;;  %s168_s4 = sshll.u32 %s217_s3, 4  ;;  %s169_s4 = int_to_ptr.vmem [resolvable:$true] %s168_s4 }
   0xa   :  { %104 = vperm.xlu1 %187, %v180_v5   ;;  %s192_s14 = scalar_lea.vmem %s169_s4, 128  ;;  %p197_p1 = scmp.lt.s32.totalorder %s169_s4, %s169_s4 }
   0xb   :  { %v54_v16 = vrot.slane %v49_v11, %v25_v13  ;;  %v58_v17 = vrot.slane %v50_v12, %v25_v13  ;;  %v26_v21 = vrot.slane %v21_v14, %v25_v13  ;;  %v30_v22 = vrot.slane %v22_v15, %v25_v13  ;;  %p193_p0 = scmp.ne.s32.totalorder %s169_s4, %s192_s14  ;;  %p198_p2 = scmp.lt.s32.totalorder %s192_s14, %s192_s14 }
   0xc   :  { %97 = vperm.xlu0 %186, %v94_v6   ;;  %v85_v26 = vrot.slane %v80_v18, %v25_v13  ;;  %v89_v27 = vrot.slane %v81_v19, %v25_v13  ;;  %v116_v34 = vrot.slane %v111_v28, %v25_v13  ;;  %v120_v35 = vrot.slane %v112_v29, %v25_v13 }
   0xd   :  { %v59_v24 = vadd.f32 %v54_v16, %v49_v11  ;;  %v60_v25 = vadd.f32 %v58_v17, %v50_v12  ;;  %v31_v30 = vadd.f32 %v26_v21, %v21_v14  ;;  %v32_v31 = vadd.f32 %v30_v22, %v22_v15  ;;  %p199_p3 = por %p198_p2, %p197_p1 }
   0xe   :  { %135 = vperm.xlu1 %187, %v181_v7   ;;  %v90_v38 = vadd.f32 %v85_v26, %v80_v18  ;;  %v91_v39 = vadd.f32 %v89_v27, %v81_v19  ;;  %v121_v44 = vadd.f32 %v116_v34, %v111_v28  ;;  %v122_v45 = vadd.f32 %v120_v35, %v112_v29 }
   0xf   :  { %p200_p4 = pnand %p199_p3, %p193_p0 }
  0x10   :  { %128 = vperm.xlu0 %186, %v125_v8  }
  0x81   :  { %v45_v20 = vpop.permute.xlu1 %44 }
  0x83   :  { %v38_v23 = vpop.permute.xlu0 %37 }
  0x84   :  { %v40_v40 = vmul.f32 %v38_v23, %v31_v30  ;;  %v41_v41 = vmul.f32 %v38_v23, %v32_v31 }
  0x85   :  { %v74_v32 = vpop.permute.xlu1 %73 }
  0x86   :  { %v47_v50 = vadd.f32 %v45_v20, %v40_v40  ;;  %v48_v51 = vadd.f32 %v45_v20, %v41_v41 }
  0x87   :  { %v67_v33 = vpop.permute.xlu0 %66 }
  0x88   :  { %v69_v36 = vmul.f32 %v67_v33, %v59_v24  ;;  %v70_v37 = vmul.f32 %v67_v33, %v60_v25 }
  0x89   :  { %v105_v42 = vpop.permute.xlu1 %104 }
  0x8a   :  { %v76_v46 = vadd.f32 %v74_v32, %v69_v36  ;;  %v77_v47 = vadd.f32 %v74_v32, %v70_v37 }
  0x8b   :  { %v98_v43 = vpop.permute.xlu0 %97 }
  0x8c   :  { %v100_v48 = vmul.f32 %v98_v43, %v90_v38  ;;  %v101_v49 = vmul.f32 %v98_v43, %v91_v39  ;;  %v78_v55 = vmul.f32 %v76_v46, %v47_v50  ;;  %v79_v56 = vmul.f32 %v77_v47, %v48_v51 }
  0x8d   :  { %v136_v59 = vpop.permute.xlu1 %135 }
  0x8e   :  { %v107_v52 = vadd.f32 %v105_v42, %v100_v48  ;;  %v108_v53 = vadd.f32 %v105_v42, %v101_v49 }
  0x8f   :  { %v129_v54 = vpop.permute.xlu0 %128 }
  0x90   :  { %v131_v57 = vmul.f32 %v129_v54, %v121_v44  ;;  %v132_v58 = vmul.f32 %v129_v54, %v122_v45  ;;  %v109_v60 = vmul.f32 %v107_v52, %v78_v55  ;;  %v110_v61 = vmul.f32 %v108_v53, %v79_v56 }
  0x92   :  { %v138_v62 = vadd.f32 %v136_v59, %v131_v57  ;;  %v139_v63 = vadd.f32 %v136_v59, %v132_v58 }
  0x94   :  { %v140_v0 = vmul.f32 %v138_v62, %v109_v60  ;;  %v141_v1 = vmul.f32 %v139_v63, %v110_v61 }
  0x96   :  { %v143_v2 = vsel %vm142_vm0, %v140_v0, 0.0  ;;  %v150_v3 = vsel %vm142_vm0, %v141_v1, 0.0 }
  0x97   :  { %v144_v4 = vrot.slane %v143_v2, 4  ;;  %v151_v5 = vrot.slane %v150_v3, 4 }
  0x99   :  { %v145_v6 = vadd.f32 %v144_v4, %v143_v2  ;;  %v152_v7 = vadd.f32 %v151_v5, %v150_v3 }
  0x9b   :  { %v146_v8 = vrot.slane %v145_v6, 2  ;;  %v153_v9 = vrot.slane %v152_v7, 2 }
  0x9d   :  { %v147_v10 = vadd.f32 %v146_v8, %v145_v6  ;;  %v154_v11 = vadd.f32 %v153_v9, %v152_v7 }
  0x9f   :  { %v148_v12 = vrot.slane %v147_v10, 1  ;;  %v155_v13 = vrot.slane %v154_v11, 1 }
  0xa1   :  { %v149_v14 = vadd.f32 %v148_v12, %v147_v10  ;;  %v156_v15 = vadd.f32 %v155_v13, %v154_v11 }
  0xa3   :  { %188 = vrcp.f32 %v149_v14 }
  0xa4   :  { %190 = vrcp.f32 %v156_v15 }
  0xad   :  { %v189_v16 = vpop.eup %188 }
  0xae   :  { %v191_v17 = vpop.eup %190  ;;  %v159_v18 = vmul.f32 %v189_v16, %v140_v0 }
  0xaf   :  { %v160_v19 = vmul.f32 %v191_v17, %v141_v1 }
  0xb0   :  { %161 = vst [vmem:[#allocation2] sm:$0xf] %v159_v18 }
  0xb1   :  { %162 = vst [vmem:[#allocation2 + $0x4] sm:$0xf] %v160_v19 }
  0xb2   :  { %203 = shalt.err (!%p200_p4)
}
  0xb3   :  { %s204_s17 = scalar_lea.hbm %s303_s5, 128 }
  0xb4   :  { %p205_p5 = scmp.ne.s32.totalorder %s303_s5, %s204_s17  ;;  %p208_p6 = scmp.lt.u32.totalorder %s204_s17, %s303_s5 }
  0xb6   :  { %p210_p7 = pnand %p208_p6, %p205_p5 }
  0xb8   :  { %213 = shalt.err (!%p210_p7)
}
  0xb9   :  { %s218_s22 = smov 64   ;;  %s219_s23 = smov 4  }
  0xba   :  { %174 = dma.vmem_to_hbm [thread:$0]  %s169_s4, 128, %s303_s5, [#allocation3], %s218_s22, %s218_s22, %s219_s23  }
  0xbb   :  { %214 = dma.done.wait [#allocation3], 128  }
  0xbc   :  { %215 = vsyncadd [#allocation3], 4294967168 }
  0xbd   :  { %178 = vsyncpa [#allocation3], 1 }

</bundles_post_ra>
